<compile_context>
chip_gen: v7x
topology: tpu7x:2x2x1
jax: 0.10.0
libtpu: 0.0.40
codegen_flags: <defaults>
</compile_context>

<pallas_src>
import functools

import jax
import jax.numpy as jnp
from jax.experimental import pallas as pl
from jax.experimental.pallas import tpu as pltpu


def _round_up(x, m):
    return ((x + m - 1) // m) * m


# --------------------------------------------------------------------------
# Glue: F.interpolate(mode='nearest') -- pure index gather, plain JAX
# --------------------------------------------------------------------------
def nearest_resize_nchw(x, out_hw):
    N, C, H, W = x.shape
    oh, ow = out_hw
    if H % oh == 0 and W % ow == 0:
        # exact downscale: PyTorch 'nearest' (floor(dst*in/out)) == strided slice
        return x[:, :, :: H // oh, :: W // ow]
    ridx = (jnp.arange(oh) * H // oh).astype(jnp.int32)
    cidx = (jnp.arange(ow) * W // ow).astype(jnp.int32)
    return x[:, :, ridx[:, None], cidx[None, :]]


# --------------------------------------------------------------------------
# One-time weight preparation (hoisted out of the per-call path):
#   * fold ToTensor (/255) + Normalize(mean, std) into the linear head,
#   * cast the folded weight to bf16 (kernel is HBM-bound on the W stream),
#   * pad K to a multiple of 128 once, so there is no per-call W copy/pad.
# --------------------------------------------------------------------------
def prepare_faceid_weights(w_emb, b_emb, mean, std, spatial,
                           weight_dtype=jnp.bfloat16):
    K, D = w_emb.shape
    assert K % spatial == 0, "flattened K must be C * spatial (channel-major)"
    scale_c = 1.0 / (255.0 * std.astype(jnp.float32))        # /255 folded in
    offset_c = -mean.astype(jnp.float32) / std.astype(jnp.float32)
    scale_k = jnp.repeat(scale_c, spatial)                    # (K,)
    offset_k = jnp.repeat(offset_c, spatial)                  # (K,)
    w32 = w_emb.astype(jnp.float32)
    w_folded = w32 * scale_k[:, None]
    b_folded = b_emb.reshape(1, -1).astype(jnp.float32) + offset_k[None, :] @ w32
    k_pad = _round_up(K, 128)
    w_pad = (jnp.zeros((k_pad, D), weight_dtype)
             .at[:K, :].set(w_folded.astype(weight_dtype)))
    return w_pad, b_folded                                    # (k_pad, D), (1, D) f32


def _choose_tk(k_pad, d, w_bytes, tk_max=None, target_bytes=4 << 20):
    """Largest multiple of 128 that divides k_pad with W tile <= ~target_bytes."""
    cap = max(128, (target_bytes // max(1, d * w_bytes)) // 128 * 128)
    if tk_max is not None:
        cap = min(cap, max(128, (tk_max // 128) * 128))       # force 128-multiple
    units = k_pad // 128
    best = 1
    for div in range(1, units + 1):
        if units % div == 0 and div * 128 <= cap:
            best = div
    return best * 128


# --------------------------------------------------------------------------
# Kernel: K-tiled embedding matmul (MXU) fused with F.normalize(p=2, dim=1)
# --------------------------------------------------------------------------
def embed_l2norm_kernel(x_ref, w_ref, b_ref, raw_ref, norm_ref, acc_ref):
    # grid = (N tiles ["parallel"], K tiles ["arbitrary", innermost])
    # x_ref:    (tn, tk)  raw resized pixels (preprocessing folded into W/b)
    # w_ref:    (tk, D)   K-tile of the folded (bf16) embedding weight
    # b_ref:    (1, D)    folded bias (f32)
    # raw_ref:  (tn, D)   un-normalized latent  (written only at last K step)
    # norm_ref: (tn, D)   L2-normalized latent  (written only at last K step)
    # acc_ref:  (tn, D)   f32 accumulator scratch, resident across K steps
    k = pl.program_id(1)

    @pl.when(k == 0)
    def _init():
        acc_ref[...] = jnp.zeros_like(acc_ref)

    x = x_ref[...]
    w = w_ref[...]
    if x.dtype != w.dtype:  # no-op: host already casts x to the weight dtype
        x = x.astype(w.dtype)
    acc_ref[...] += jnp.dot(x, w, preferred_element_type=jnp.float32)

    @pl.when(k == pl.num_programs(1) - 1)
    def _finalize():
        latent = acc_ref[...] + b_ref[...].astype(jnp.float32)
        raw_ref[...] = latent
        # F.normalize(p=2, dim=1, eps=1e-12): latent * rsqrt(max(sumsq, eps^2))
        sumsq = jnp.sum(latent * latent, axis=-1, keepdims=True)
        norm_ref[...] = latent * jax.lax.rsqrt(jnp.maximum(sumsq, 1e-24))


def faceid_embed(x_flat, w_pad, b_fold, *, tk_max=None, tn_max=256):
    """x_flat: (N, K) raw resized pixels (already in the weight dtype);
    w_pad: (k_pad, D) folded, padded weights; b_fold: (1, D) folded bias.

    Returns (raw_latent, l2_normalized_latent), both (N, D) f32.
    """
    N, K = x_flat.shape
    k_pad, D = w_pad.shape
    assert K <= k_pad and k_pad % 128 == 0

    tn = min(_round_up(N, 8), _round_up(tn_max, 8))       # sublane-aligned N tile
    n_pad = _round_up(N, tn)
    w_bytes = jnp.dtype(w_pad.dtype).itemsize
    x_bytes = jnp.dtype(x_flat.dtype).itemsize
    tk = _choose_tk(k_pad, D, w_bytes, tk_max=tk_max)     # 128-mult divisor of k_pad

    x_p = jnp.zeros((n_pad, k_pad), x_flat.dtype).at[:N, :K].set(x_flat)

    # Explicit VMEM budget: double-buffered W/x tiles + accumulator + outputs.
    need = (2 * tk * D * w_bytes
            + 2 * tn * tk * x_bytes
            + tn * D * 4
            + 2 * 2 * tn * D * 4
            + 2 * D * 4)
    vmem_limit = int(min(max(need + (4 << 20), 32 << 20), 64 << 20))

    raw, norm = pl.pallas_call(
        embed_l2norm_kernel,
        out_shape=(jax.ShapeDtypeStruct((n_pad, D), jnp.float32),
                   jax.ShapeDtypeStruct((n_pad, D), jnp.float32)),
        grid_spec=pltpu.PrefetchScalarGridSpec(
            num_scalar_prefetch=0,
            grid=(n_pad // tn, k_pad // tk),
            in_specs=[
                pl.BlockSpec((tn, tk), lambda n, k: (n, k)),
                pl.BlockSpec((tk, D), lambda n, k: (k, 0)),
                pl.BlockSpec((1, D), lambda n, k: (0, 0)),
            ],
            out_specs=(
                pl.BlockSpec((tn, D), lambda n, k: (n, 0)),
                pl.BlockSpec((tn, D), lambda n, k: (n, 0)),
            ),
            scratch_shapes=[pltpu.VMEM((tn, D), jnp.float32)],
        ),
        compiler_params=pltpu.CompilerParams(
            dimension_semantics=("parallel", "arbitrary"),
            vmem_limit_bytes=vmem_limit),
    )(x_p, w_pad, b_fold)
    return raw[:N], norm[:N]


# --------------------------------------------------------------------------
# Full forward (hot path): layout permute + nearest resize + fused kernel
# --------------------------------------------------------------------------
@functools.partial(jax.jit, static_argnames=("input_shape", "normalize", "tk_max"))
def faceid_forward(img_hwc_batch, *, input_shape, w_pad, b_fold,
                   normalize=True, tk_max=None):
    # ToTensor layout permute: N,H,W,C -> N,C,H,W.  The /255 + Normalize are
    # folded into W/b; nearest resize commutes with the per-pixel affine map,
    # so it runs first on the raw pixels (only surviving pixels are touched).
    x_nchw = jnp.transpose(img_hwc_batch, (0, 3, 1, 2))
    x_rs = nearest_resize_nchw(x_nchw, input_shape)
    N, C, oh, ow = x_rs.shape
    # Pixels 0..255 are exact in bf16 -> no precision loss, no in-kernel cast.
    x_flat = x_rs.reshape(N, C * oh * ow).astype(w_pad.dtype)
    raw, norm = faceid_embed(x_flat, w_pad, b_fold, tk_max=tk_max)
    # Both outputs come from the single kernel: no second pass for normalize=False.
    return norm if normalize else raw


if __name__ == "__main__":
    key = jax.random.PRNGKey(0)
    k_img, k_w, k_b = jax.random.split(key, 3)

    # Small shapes consistent with the module: batch=2, RGB 16x16 images,
    # resized ("input_shape") to 8x8, embedding dim 128.
    N, H, W, C = 2, 16, 16, 3
    input_shape = (8, 8)
    D = 128
    K = C * input_shape[0] * input_shape[1]

    # Synthetic uint8 image batch (HWC, values 0..255)
    img = jax.random.randint(k_img, (N, H, W, C), 0, 256, dtype=jnp.int32)
    img = img.astype(jnp.uint8)

    mean = jnp.array([0.485, 0.456, 0.406], dtype=jnp.float32)
    std = jnp.array([0.229, 0.224, 0.225], dtype=jnp.float32)

    # TODO(synk): the real backbone comes from torch.load(model_path) and its
    # architecture is unknown; a deterministic linear embedding head stands in.
    w_emb = jax.random.normal(k_w, (K, D), dtype=jnp.float32) * 0.02
    b_emb = jax.random.normal(k_b, (1, D), dtype=jnp.float32) * 0.01

    # One-time weight prep (fold + pad + bf16 cast), hoisted off the hot path.
    w_pad, b_fold = prepare_faceid_weights(
        w_emb, b_emb, mean, std, spatial=input_shape[0] * input_shape[1])

    # tk_max=128 so the tiny demo (K=192 -> padded 256) exercises the
    # multi-step K accumulator pipeline; the default auto-sizes ~4 MiB W tiles.
    out = faceid_forward(img, input_shape=input_shape, w_pad=w_pad,
                         b_fold=b_fold, normalize=True, tk_max=128)
    out = jax.block_until_ready(out)
    assert out.shape == (N, D)

    # Pure-JAX reference following the exact original op order
    # (normalize full image -> nearest resize -> linear head -> L2 normalize).
    x_ref = jnp.transpose(img.astype(jnp.float32), (0, 3, 1, 2)) / 255.0
    x_ref = (x_ref - mean[None, :, None, None]) / std[None, :, None, None]
    x_ref = nearest_resize_nchw(x_ref, input_shape).reshape(N, -1)
    lat = jnp.dot(x_ref, w_emb, precision=jax.lax.Precision.HIGHEST) + b_emb
    ref = lat / jnp.maximum(jnp.linalg.norm(lat, axis=1, keepdims=True), 1e-12)
    err = float(jnp.max(jnp.abs(out - ref)))
    # bf16 weight stream -> ~2^-9 relative precision; well within 1e-2 here.
    assert jnp.allclose(out, ref, rtol=1e-2, atol=1e-2), err

    print("KERNEL_OK")
</pallas_src>

<mosaic_0001>
module attributes {stable_mosaic.version = 11 : i64} {
  func.func @embed_l2norm_kernel(%arg0: i32, %arg1: i32, %arg2: memref<8x128xbf16, #tpu.memory_space<vmem>>, %arg3: memref<128x128xbf16, #tpu.memory_space<vmem>>, %arg4: memref<1x128xf32, #tpu.memory_space<vmem>>, %arg5: memref<8x128xf32, #tpu.memory_space<vmem>>, %arg6: memref<8x128xf32, #tpu.memory_space<vmem>>, %arg7: memref<8x128xf32, #tpu.memory_space<vmem>>) attributes {dimension_semantics = [#tpu.dimension_semantics<parallel>, #tpu.dimension_semantics<arbitrary>], iteration_bounds = array<i64: 1, 2>, scalar_prefetch = 0 : i64, scratch_operands = 1 : i64, tpu.core_type = #tpu.core_type<tc>, window_params = [{transform_indices = @transform_0, window_bounds = array<i64: 8, 128>}, {transform_indices = @transform_1, window_bounds = array<i64: 128, 128>}, {pipeline_mode = #tpu.pipeline_mode<synchronous>, transform_indices = @transform_2, window_bounds = array<i64: 1, 128>}, {transform_indices = @transform_3, window_bounds = array<i64: 8, 128>}, {transform_indices = @transform_4, window_bounds = array<i64: 8, 128>}]} {
    %c0_i32 = arith.constant 0 : i32
    %0 = arith.cmpi eq, %arg1, %c0_i32 : i32
    %1 = arith.extui %0 : i1 to i32
    %c0_i32_0 = arith.constant 0 : i32
    %2 = arith.cmpi ne, %1, %c0_i32_0 : i32
    scf.if %2 {
      %cst_9 = arith.constant 0.000000e+00 : f32
      %12 = vector.broadcast %cst_9 : f32 to vector<8x128xf32>
      %c0_10 = arith.constant 0 : index
      %c0_11 = arith.constant 0 : index
      %13 = vector.load %arg7[%c0_10, %c0_11] : memref<8x128xf32, #tpu.memory_space<vmem>>, vector<8x128xf32>
      tpu.vector_store %arg7[%c0_10, %c0_11], %12 {strides = array<i32>} : memref<8x128xf32, #tpu.memory_space<vmem>>, vector<8x128xf32>,
    } else {
    }
    %c0 = arith.constant 0 : index
    %c0_1 = arith.constant 0 : index
    %3 = vector.load %arg2[%c0, %c0_1] : memref<8x128xbf16, #tpu.memory_space<vmem>>, vector<8x128xbf16>
    %c0_2 = arith.constant 0 : index
    %c0_3 = arith.constant 0 : index
    %4 = vector.load %arg3[%c0_2, %c0_3] : memref<128x128xbf16, #tpu.memory_space<vmem>>, vector<128x128xbf16>
    %c0_4 = arith.constant 0 : index
    %c0_5 = arith.constant 0 : index
    %5 = vector.load %arg7[%c0_4, %c0_5] : memref<8x128xf32, #tpu.memory_space<vmem>>, vector<8x128xf32>
    %cst = arith.constant dense<0.000000e+00> : vector<8x128xf32>
    %6 = tpu.matmul %3, %4, %cst {dimension_numbers = #tpu.dot_dimension_numbers<[1], [0], [0], [1], [0, 0, 1, 1], [], []>} : vector<8x128xbf16>, vector<128x128xbf16>, vector<8x128xf32> -> vector<8x128xf32>
    %7 = arith.addf %5, %6 : vector<8x128xf32>
    %c0_6 = arith.constant 0 : index
    %c0_7 = arith.constant 0 : index
    %8 = vector.load %arg7[%c0_6, %c0_7] : memref<8x128xf32, #tpu.memory_space<vmem>>, vector<8x128xf32>
    tpu.vector_store %arg7[%c0_6, %c0_7], %7 {strides = array<i32>} : memref<8x128xf32, #tpu.memory_space<vmem>>, vector<8x128xf32>,
    %c1_i32 = arith.constant 1 : i32
    %9 = arith.cmpi eq, %arg1, %c1_i32 : i32
    %10 = arith.extui %9 : i1 to i32
    %c0_i32_8 = arith.constant 0 : i32
    %11 = arith.cmpi ne, %10, %c0_i32_8 : i32
    scf.if %11 {
      %c0_9 = arith.constant 0 : index
      %c0_10 = arith.constant 0 : index
      %12 = vector.load %arg7[%c0_9, %c0_10] : memref<8x128xf32, #tpu.memory_space<vmem>>, vector<8x128xf32>
      %c0_11 = arith.constant 0 : index
      %c0_12 = arith.constant 0 : index
      %13 = vector.load %arg4[%c0_11, %c0_12] : memref<1x128xf32, #tpu.memory_space<vmem>>, vector<1x128xf32>
      %14 = vector.broadcast %13 : vector<1x128xf32> to vector<8x128xf32>
      %15 = arith.addf %12, %14 : vector<8x128xf32>
      %c0_13 = arith.constant 0 : index
      %c0_14 = arith.constant 0 : index
      %16 = vector.load %arg5[%c0_13, %c0_14] : memref<8x128xf32, #tpu.memory_space<vmem>>, vector<8x128xf32>
      tpu.vector_store %arg5[%c0_13, %c0_14], %15 {strides = array<i32>} : memref<8x128xf32, #tpu.memory_space<vmem>>, vector<8x128xf32>,
      %17 = arith.mulf %15, %15 : vector<8x128xf32>
      %cst_15 = arith.constant dense<0.000000e+00> : vector<8xf32>
      %18 = vector.multi_reduction <add>, %17, %cst_15 [1] : vector<8x128xf32> to vector<8xf32>
      %19 = vector.shape_cast %18 : vector<8xf32> to vector<8x1xf32>
      %cst_16 = arith.constant 1.000000e-24 : f32
      %20 = vector.broadcast %cst_16 : f32 to vector<8x1xf32>
      %21 = arith.maximumf %19, %20 : vector<8x1xf32>
      %22 = math.rsqrt %21 : vector<8x1xf32>
      %23 = vector.broadcast %22 : vector<8x1xf32> to vector<8x128xf32>
      %24 = arith.mulf %15, %23 : vector<8x128xf32>
      %c0_17 = arith.constant 0 : index
      %c0_18 = arith.constant 0 : index
      %25 = vector.load %arg6[%c0_17, %c0_18] : memref<8x128xf32, #tpu.memory_space<vmem>>, vector<8x128xf32>
      tpu.vector_store %arg6[%c0_17, %c0_18], %24 {strides = array<i32>} : memref<8x128xf32, #tpu.memory_space<vmem>>, vector<8x128xf32>,
    } else {
    }
    return
  }
  func.func @transform_0(%arg0: i32, %arg1: i32) -> (i32, i32) {
    %c0_i32 = arith.constant 0 : i32
    return %arg0, %arg1 : i32, i32
  }
  func.func @transform_1(%arg0: i32, %arg1: i32) -> (i32, i32) {
    %c0_i32 = arith.constant 0 : i32
    %c0_i32_0 = arith.constant 0 : i32
    return %arg1, %c0_i32 : i32, i32
  }
  func.func @transform_2(%arg0: i32, %arg1: i32) -> (i32, i32) {
    %c0_i32 = arith.constant 0 : i32
    %c0_i32_0 = arith.constant 0 : i32
    %c0_i32_1 = arith.constant 0 : i32
    return %c0_i32, %c0_i32_0 : i32, i32
  }
  func.func @transform_3(%arg0: i32, %arg1: i32) -> (i32, i32) {
    %c0_i32 = arith.constant 0 : i32
    %c0_i32_0 = arith.constant 0 : i32
    return %arg0, %c0_i32 : i32, i32
  }
  func.func @transform_4(%arg0: i32, %arg1: i32) -> (i32, i32) {
    %c0_i32 = arith.constant 0 : i32
    %c0_i32_0 = arith.constant 0 : i32
    return %arg0, %c0_i32 : i32, i32
  }
}

</mosaic_0001>

<bundles_post_ra>
// kernel: faceid_forward.1
= control target key start
LH: loop header
LB: loop body
LE: loop exit
PB: predicated region body
PF: predicated region fallthrough
CT: control target
= control target key end

     0   :  { %10 = vsyncpa [#allocation4], 0  ;;  %s966_s0 = inlined_call_operand.vmem [shape: bf16[8,256], index: 0, kind: input, shape index: {}]   ;;  %s967_s1 = inlined_call_operand.hbm [shape: bf16[256,128], index: 1, kind: input, shape index: {}]   ;;  %s968_s2 = inlined_call_operand.vmem [shape: f32[1,128], index: 2, kind: input, shape index: {}]   ;;  %s969_s3 = inlined_call_operand.hbm [shape: f32[8,128], index: 3, kind: output, shape index: {0}]   ;;  %s970_s4 = inlined_call_operand.vmem [shape: f32[8,128], index: 4, kind: output, shape index: {1}]  }
   0x1   :  { %12 = vsyncpa [#allocation4 + $0x1], 0 }
   0x2   :  { %13 = vsyncpa [#allocation5], 0  ;;  %s791_s15 = smov 0   ;;  %s793_s16 = smov 0  }
   0x3   :  { %s795_s17 = smov 0   ;;  %s797_s18 = smov 0  }
   0x4   :  { %s799_s19 = smov 0   ;;  %s801_s20 = smov 0  }
   0x5 LB: > { %s515_s21 = sadd.s32 4294967295, %s757_s20   ;;  %s28_s22 = sadd.s32 1, %s753_s19  ;;  %s757_s20 = sphi %s801_s20, %s19_s20   ;;  %s753_s19 = sphi %s799_s19, %s979_s19   ;;  %s749_s18 = sphi %s797_s18, %s978_s18   ;;  %s745_s17 = sphi %s795_s17, %s977_s17   ;;  %s741_s16 = sphi %s793_s16, %s976_s16   ;;  %s737_s15 = sphi %s791_s15, %s975_s15  }
   0x6   : > { %p29_p0 = scmp.ge.s32.totalorder %s28_s22, 2  ;;  %s66_s23 = sadd.s32 1, %s745_s17 }
   0x7   : > { %p73_p1 = scmp.ne.s32.totalorder %s745_s17, %s741_s16  ;;  %p74_p2 = scmp.eq.s32.totalorder %s757_s20, 0 }
   0x8   : > { %s981_s22 = smov (%p29_p0, %s28_s22), 0  ;;  %p79_p4 = scmp.ne.s32.totalorder %s741_s16, %s737_s15 }
   0x9   : > { %p827_p3 = por %p74_p2, %p73_p1  ;;  %s63_s25 = ssub.s32 %s753_s19, %s981_s22 }
   0xa   : > { %p80_p5 = scmp.eq.s32.totalorder %s515_s21, 0  ;;  %p64_p6 = scmp.eq.s32.totalorder %s63_s25, 0 }
   0xb   : > { %p580_p8 = scmp.lt.s32.totalorder %s757_s20, 2  ;;  %s190_s28 = sand.u32 1, %s745_s17  }
   0xc   : > { %p836_p7 = por %p80_p5, %p79_p4  ;;  %s540_s29 = sshll.u32 %s753_s19, 10 }
   0xd   : > { %s842_s27 = scalar_select %p64_p6, %s745_s17, %s66_s23  }
   0xe   : > { %s518_s30 = sshll.u32 %s190_s28, 6  ;;  %s849_s7 = scalar_lea.hbm %s967_s1, %s540_s29 }
   0xf   : > { %s194_s8 = scalar_lea.vmem [#allocation3], %s518_s30  ;;  %p853_p9 = pnand %p580_p8, %p827_p3 }
  0x10   : > { %s201_s9 = sshll.u32 %s194_s8, 4  ;;  %s859_s11 = scalar_lea.sflag [#allocation4], %s190_s28  ;;  %s857_s9 = int_to_ptr.vmem [resolvable:$true] %s201_s9 }
  0x11   : > { %s647_s12 = scalar_lea.hbm %s849_s7, 1024  ;;  %p649_p11 = pneg %p853_p9 }
  0x12   : > { %p648_p10 = scmp.ne.s32.totalorder %s849_s7, %s647_s12  ;;  %s652_s15 = scalar_lea.hbm %s967_s1, 2048 }
  0x13   : > { %p653_p0 = scmp.lt.u32.totalorder %s849_s7, %s967_s1  ;;  %p654_p1 = scmp.lt.u32.totalorder %s652_s15, %s647_s12 }
  0x14   : > { %p650_p12 = pnand %p649_p11, %p648_p10  ;;  %p656_p3 = scmp.lt.u32.totalorder %s647_s12, %s849_s7 }
  0x15   : > { %p655_p2 = por %p654_p1, %p653_p0 }
  0x16   : > { %p651_p13 = pneg %p650_p12 }
  0x17   : > { %p657_p4 = por %p656_p3, %p655_p2 }
  0x19   : > { %p658_p5 = pnand %p657_p4, %p651_p13 }
  0x1b   : > { %661 = shalt.err (!%p658_p5)
}
  0x1c   : > { %s662_s25 = scalar_lea.vmem %s857_s9, 1024  ;;  %s759_s28 = smov [#allocation3]  }
  0x1d   : > { %p663_p6 = scmp.ne.s32.totalorder %s857_s9, %s662_s25  ;;  %s667_s29 = sshll.u32 %s759_s28, 4  ;;  %s668_s29 = int_to_ptr.vmem [resolvable:$false] %s667_s29 }
  0x1e   : > { %s669_s30 = scalar_lea.vmem %s668_s29, 2048  ;;  %p670_p12 = scmp.lt.s32.totalorder %s857_s9, %s668_s29 }
  0x1f   : > { %p665_p8 = pnand %p663_p6, %p649_p11  ;;  %p671_p0 = scmp.lt.s32.totalorder %s669_s30, %s662_s25 }
  0x21   : > { %p666_p10 = pneg %p665_p8  ;;  %p672_p1 = por %p671_p0, %p670_p12 }
  0x23   : > { %p673_p2 = pnand %p672_p1, %p666_p10 }
  0x25   : > { %676 = shalt.err (!%p673_p2)
}
  0x26   : > { %s760_s5 = smov 64   ;;  %s761_s6 = smov 4  }
  0x27   : > { %579 = dma.hbm_to_vmem [thread:$0]  (!%p853_p9), %s849_s7, 1024, %s857_s9, %s859_s11, %s760_s5, %s760_s5, %s761_s6  }
  0x28   : > { %p521_p11 = scmp.ge.s32.totalorder %s757_s20, 1  ;;  %p209_p13 = scmp.lt.s32.totalorder %s757_s20, 3 }
  0x2a   : > { %p210_p3 = pnand %p521_p11, %p209_p13 }
  0x2b   : > { %s215_s8 = sand.u32 (!%p210_p3), 1, %s741_s16  }
  0x2c   : > { %213 = sbr.rel (%p210_p3) target bundleno = 504 (0x1f8), region = 32  ;;  %s522_s12 = sshll.u32 (!%p210_p3), %s215_s8, 6 }
  0x2d   : > { %s216_s13 = scalar_lea.sflag (!%p210_p3), [#allocation4], %s215_s8  ;;  %s890_s14 = scalar_lea.vmem (!%p210_p3), [#allocation3], %s522_s12 }
  0x33   : > { %728 = dma.done.wait (%p836_p7), %s216_s13, 1024  }
  0x34   : > { %730 = vsyncadd (%p836_p7), %s216_s13, 4294966272  ;;  %p253_p4 = scmp.lt.s32.totalorder %s749_s18, 1  ;;  %p524_p9 = scmp.ne.s32.totalorder %s749_s18, 0 }
  0x35   : > { %v762_v0 = vmov (!%p524_p9), 0.0  }
  0x36   : > { %s254_s7 = scalar_select %p253_p4, %s749_s18, 1 }
  0x37   : > { %268 = sbr.rel (%p524_p9) target bundleno = 62 (0x3e), region = 40  ;;  %269 = vst [vmem:[#allocation2] sm:$0xff] (!%p524_p9), %v762_v0 }
  0x38   : > { %s523_s9 = sshll.u32 %s254_s7, 2 }
  0x39   : > { %s901_s15 = scalar_lea.vmem %s966_s0, %s523_s9 }
  0x3e PF: > { %v637_v1 = vld [vmem:[%s890_s14] sm:$0xff]   ;;  %v763_v2 = vmov 0.0   ;;  %v638_v3 = vld [vmem:[%s890_s14 + $0x8] sm:$0xff]   ;;  %vm764_vm0 = vmmov 0   ;;  %v639_v4 = vld [vmem:[%s890_s14 + $0x10] sm:$0xff]   ;;  %p533_p7 = scmp.ne.s32.totalorder %s749_s18, 1 }
  0x3f   : > { %550 = vmatprep.subr.bf16.mxu0 %v763_v2  ;;  %566 = vmatprep.mubr.msk.bf16.mxu0 %vm764_vm0, %v763_v2  ;;  %v640_v5 = vld [vmem:[%s890_s14 + $0x18] sm:$0xff]   ;;  %v641_v6 = vld [vmem:[%s890_s14 + $0x20] sm:$0xff]   ;;  %v642_v7 = vld [vmem:[%s890_s14 + $0x28] sm:$0xff]  }
  0x40   : > { %551 = vmatpush3.bf16.msra.mxu0 %v637_v1  ;;  %v643_v8 = vld [vmem:[%s890_s14 + $0x30] sm:$0xff]   ;;  %v644_v9 = vld [vmem:[%s890_s14 + $0x38] sm:$0xff]  }
  0x41   : > { %552 = vmatprep.subr.bf16.mxu0 %v763_v2  ;;  %v270_v10 = vld [vmem:[%s901_s15] sm:$0xf] }
  0x42   : > { %v287_v11 = vld [vmem:[#allocation2] sm:$0xff] }
  0x43   : > { %v534_v18 = vld [vmem:[%s968_s2] ss:$0 sm:$0xff] (!%p533_p7) }
  0x44   : > { %553 = vmatpush3.bf16.msra.mxu0 %v638_v3 }
  0x45   : > { %554 = vmatprep.subr.bf16.mxu0 %v763_v2 }
  0x48   : > { %555 = vmatpush3.bf16.msra.mxu0 %v639_v4 }
  0x49   : > { %556 = vmatprep.subr.bf16.mxu0 %v763_v2 }
  0x4c   : > { %557 = vmatpush3.bf16.msra.mxu0 %v640_v5 }
  0x4d   : > { %558 = vmatprep.subr.bf16.mxu0 %v763_v2 }
  0x50   : > { %559 = vmatpush3.bf16.msra.mxu0 %v641_v6 }
  0x51   : > { %560 = vmatprep.subr.bf16.mxu0 %v763_v2 }
  0x54   : > { %561 = vmatpush3.bf16.msra.mxu0 %v642_v7 }
  0x55   : > { %562 = vmatprep.subr.bf16.mxu0 %v763_v2 }
  0x58   : > { %563 = vmatpush3.bf16.msra.mxu0 %v643_v8 }
  0x59   : > { %564 = vmatprep.subr.bf16.mxu0 %v763_v2 }
  0x5c   : > { %565 = vmatpush3.bf16.msra.mxu0 %v644_v9 }
  0x5f   : > { %567 = vmatmul.mubr.bf16.vlgmr.msra.gmra.mrb[0].mxu0 %v270_v10 }
 0x12f   : > { %381 = sbr.rel (%p533_p7) target bundleno = 479 (0x1df), region = 44 }
 0x132   : > { %v370_v12 = vpop.f32.mrb[0].mxu0 }
 0x133   : > { %v376_v13 = vadd.f32 %v370_v12, %v287_v11  ;;  %v568_v14 = vpop.f32.mrb[1].mxu0 }
 0x134   : > { %v373_v15 = vpop.f32.mrb[2].mxu0 }
 0x135   : > { %377 = vst [vmem:[#allocation2] sm:$0xff] %v376_v13  ;;  %v569_v16 = vpop.f32.mrb[3].mxu0 }
 0x13c   : > { %v382_v17 = vld [vmem:[#allocation2] sm:$0xff] }
 0x13d   : > { %v390_v19 = vadd.f32 %v534_v18, %v382_v17 }
 0x13f   : > { %391 = vst [vmem:[#allocation6] sm:$0xff] %v390_v19  ;;  %v392_v20 = vmul.f32 %v390_v19, %v390_v19 }
 0x141   : > { %393 = vadd.xlane.f32.xlu0 %v392_v20 }
 0x1ce   : > { %v394_v21 = vpop.xlane.xlu0 %393 }
 0x1cf   : > { %v395_v22 = vmax.f32 %v394_v21, 1e-24 }
 0x1d1   : > { %645 = vrsqrt.f32 %v395_v22 }
 0x1db   : > { %v646_v23 = vpop.eup %645 }
 0x1dc   : > { %v397_v24 = vmul.f32 %v646_v23, %v390_v19 }
 0x1de   : > { %398 = vst [vmem:[%s970_s4] sm:$0xff] %v397_v24 }
 0x1df PF: > { %p922_p5 = scmp.eq.s32.totalorder %s515_s21, 1  ;;  %s765_s28 = smov [#allocation6]  }
 0x1e0   : > { %s412_s29 = sshll.u32 %s765_s28, 4  ;;  %s413_s29 = int_to_ptr.vmem [resolvable:$true] %s412_s29 }
 0x1e1   : > { %s677_s30 = scalar_lea.vmem %s413_s29, 128  ;;  %p684_p12 = scmp.lt.s32.totalorder %s413_s29, %s413_s29 }
 0x1e2   : > { %p678_p6 = scmp.ne.s32.totalorder %s413_s29, %s677_s30  ;;  %p685_p0 = scmp.lt.s32.totalorder %s677_s30, %s677_s30 }
 0x1e4   : > { %p679_p8 = pnand %p678_p6, %p922_p5  ;;  %p686_p1 = por %p685_p0, %p684_p12 }
 0x1e6   : > { %p680_p10 = pneg %p679_p8 }
 0x1e8   : > { %p687_p2 = pnand %p686_p1, %p680_p10 }
 0x1ea   : > { %690 = shalt.err (!%p687_p2)
}
 0x1eb   : > { %s691_s21 = scalar_lea.hbm %s969_s3, 128 }
 0x1ec   : > { %p692_p11 = scmp.ne.s32.totalorder %s969_s3, %s691_s21  ;;  %p697_p4 = scmp.lt.u32.totalorder %s691_s21, %s969_s3 }
 0x1ee   : > { %p693_p13 = pnand %p692_p11, %p922_p5 }
 0x1f0   : > { %p694_p3 = pneg %p693_p13 }
 0x1f2   : > { %p699_p9 = pnand %p697_p4, %p694_p3 }
 0x1f4   : > { %702 = shalt.err (!%p699_p9)
}
 0x1f5   : > { %573 = dma.vmem_to_hbm [thread:$0]  (%p922_p5), %s413_s29, 128, %s969_s3, [#allocation5]  }
 0x1f6   : > { %732 = dma.done.wait (%p922_p5), [#allocation5], 128  }
 0x1f7   : > { %734 = vsyncadd (%p922_p5), [#allocation5], 4294967168 }
 0x1f8 PF: > { %s19_s20 = sadd.s32 1, %s757_s20   ;;  %s975_s15 = smov %s741_s16 }
 0x1f9   : > { %p16_p7 = scmp.ge.s32.totalorder %s19_s20, 4   ;;  %s976_s16 = smov %s745_s17 }
 0x1fa   : > { %s977_s17 = smov %s842_s27  ;;  %s978_s18 = smov %s753_s19 }
 0x1fb   : > { %s979_s19 = smov %s981_s22  ;;  %18 = sbr.rel (!%p16_p7) target bundleno = 5 (0x5), region = 93 }
 0x202   :  { %435 = vsyncpa [#allocation4], 1 }
 0x203   :  { %437 = vsyncpa [#allocation4 + $0x1], 1 }
 0x204   :  { %438 = vsyncpa [#allocation5], 1 }
 0x205   :  { %440 = vsyncpa [#allocation5 + $0x1], 1 }

</bundles_post_ra>
